<compile_context>
chip_gen: v5e
topology: v5e:2x2
jax: 0.10.0
libtpu: 0.0.40
codegen_flags: <defaults>
</compile_context>

<pallas_src>
import numpy as np
import jax
import jax.numpy as jnp
from jax.experimental import pallas as pl
from jax.experimental.pallas import tpu as pltpu

_LANES = 128
_SUBLANES = 8


def _round_up(a, b):
    return ((a + b - 1) // b) * b


def _default_tile_n(c, x_itemsize):
    """Pick TILE_N from lane/sublane-padded VMEM bytes per column."""
    c_sub = _round_up(max(int(c), 1), _SUBLANES)
    # Double-buffered pipelined blocks (per column of the tile):
    #   x block:        itemsize * round_up(C, 8)
    #   target (1,T):   pads to 8 sublanes of int32  -> 32 B
    #   m_row + w_row:  two f32 rows, each padded to 8 sublanes -> 64 B
    per_col_blocks = 2 * (x_itemsize * c_sub + 32 + 64)
    # f32 intermediates materialized once (z, exp(z-zmax), onehot).
    per_col_tmp = 3 * 4 * c_sub
    budget = 10 << 20  # ~10 MiB: safe inside v5e's 16 MiB scoped-VMEM default.
    t = budget // (per_col_blocks + per_col_tmp)
    t = max(_LANES, min(8192, (t // _LANES) * _LANES))
    return int(t)


def _make_ldam_kernel(s):
    s = float(s)

    def kernel(x_ref, tgt_ref, m_ref, w_ref, num_ref, den_ref):
        x = x_ref[...].astype(jnp.float32)   # (C, T) logits, class-major
        tgt = tgt_ref[...]                   # (1, T) int32 targets
        m_t = m_ref[...]                     # (1, T) f32  m_list[target]
        w_t = w_ref[...]                     # (1, T) f32  weight[target] (0 on pad)

        c, t = x.shape

        # One-hot along the class (sublane) axis; reused for margin + gather.
        cls = jax.lax.broadcasted_iota(jnp.int32, (c, t), 0)
        onehot = (cls == tgt).astype(jnp.float32)            # (C, T)

        # Fused margin application: subtract s*m only at the target class.
        z = s * x - (s * m_t) * onehot                        # (C, T)

        # Numerically stable CE without materializing log-softmax:
        #   nll = logsumexp(z) - z[target]   (sublane reductions over C)
        zmax = jnp.max(z, axis=0, keepdims=True)              # (1, T)
        sum_e = jnp.sum(jnp.exp(z - zmax), axis=0, keepdims=True)
        z_t = jnp.sum(z * onehot, axis=0, keepdims=True)
        nll = zmax + jnp.log(sum_e) - z_t                     # (1, T)

        # Lane+sublane-dense per-tile partials (unmasked (8,128) stores).
        num_ref[...] = jnp.broadcast_to(jnp.sum(w_t * nll), (_SUBLANES, _LANES))
        den_ref[...] = jnp.broadcast_to(jnp.sum(w_t), (_SUBLANES, _LANES))

    return kernel


def ldam_loss(x, target, m_list, s=30.0, weight=None, tile_n=None,
              vmem_limit_bytes=None):
    """x: (N, C) f32/bf16 logits; target: (N,) int; m_list: (C,) f32."""
    n, c = x.shape

    if x.dtype not in (jnp.bfloat16, jnp.float32):
        x = x.astype(jnp.float32)

    if tile_n is None:
        tile_n = _default_tile_n(c, np.dtype(x.dtype).itemsize)
    tile_n = max(_LANES, _round_up(int(tile_n), _LANES))
    tile_n = min(tile_n, _round_up(n, _LANES))
    num_tiles = pl.cdiv(n, tile_n)
    # Keep >= 2 tiles for big batches so the parallel grid axis can be sharded
    # across both TensorCores on v7x; no-op for small batches / single-TC chips.
    if num_tiles == 1 and n > 4096:
        tile_n = _round_up(pl.cdiv(n, 2), _LANES)
        num_tiles = pl.cdiv(n, tile_n)
    n_pad = num_tiles * tile_n

    # --- Wrapper-side layout plumbing & tiny gathers (hoisted out of kernel) ---
    tgt = target.astype(jnp.int32)
    m_list_f = m_list.astype(jnp.float32)
    xt = x.T                                           # (C, N) class-major
    tgt_row = tgt.reshape(1, n)                        # (1, N)
    m_row = m_list_f[tgt].reshape(1, n)                # (1, N) m_list[target]
    has_weight = weight is not None
    if has_weight:
        w_row = weight.astype(jnp.float32)[tgt].reshape(1, n)
    else:
        w_row = jnp.ones((1, n), jnp.float32)          # validity mask only

    pad = n_pad - n
    if pad:
        xt = jnp.pad(xt, ((0, 0), (0, pad)))
        tgt_row = jnp.pad(tgt_row, ((0, 0), (0, pad)))
        m_row = jnp.pad(m_row, ((0, 0), (0, pad)))
        w_row = jnp.pad(w_row, ((0, 0), (0, pad)))     # pad weight 0 => no contrib

    in_specs = [
        pl.BlockSpec((c, tile_n), lambda i: (0, i)),   # logits tile (class-major)
        pl.BlockSpec((1, tile_n), lambda i: (0, i)),   # targets
        pl.BlockSpec((1, tile_n), lambda i: (0, i)),   # per-row margin
        pl.BlockSpec((1, tile_n), lambda i: (0, i)),   # per-row weight
    ]
    out_shape = (
        jax.ShapeDtypeStruct((num_tiles * _SUBLANES, _LANES), jnp.float32),
        jax.ShapeDtypeStruct((num_tiles * _SUBLANES, _LANES), jnp.float32),
    )
    out_specs = (
        pl.BlockSpec((_SUBLANES, _LANES), lambda i: (i, 0)),
        pl.BlockSpec((_SUBLANES, _LANES), lambda i: (i, 0)),
    )

    num_part, den_part = pl.pallas_call(
        _make_ldam_kernel(s),
        grid=(num_tiles,),
        in_specs=in_specs,
        out_specs=out_specs,
        out_shape=out_shape,
        compiler_params=pltpu.CompilerParams(
            dimension_semantics=("parallel",),
            vmem_limit_bytes=vmem_limit_bytes,
        ),
    )(xt, tgt_row, m_row, w_row)

    # Tiny final reduce over per-tile partials in plain JAX (one value per tile).
    num_total = jnp.sum(num_part.reshape(num_tiles, -1)[:, 0])
    if has_weight:
        den_total = jnp.sum(den_part.reshape(num_tiles, -1)[:, 0])
        return num_total / den_total
    return num_total / jnp.float32(n)


def make_m_list(cls_num_list, max_m=0.5):
    cls_num_list = np.asarray(cls_num_list, dtype=np.float64)
    m_list = 1.0 / np.sqrt(np.sqrt(cls_num_list))
    m_list = m_list * (max_m / np.max(m_list))
    return jnp.asarray(m_list, dtype=jnp.float32)


def make_drw_weights(cls_num_list, beta=0.9999):
    cls = np.asarray(cls_num_list, dtype=np.float64)
    effective_num = 1.0 - np.power(beta, cls)
    w = (1.0 - beta) / effective_num
    w = w / np.sum(w) * len(cls)
    return jnp.asarray(w, dtype=jnp.float32)


def _ldam_reference(x, target, m_list, s, weight):
    n, c = x.shape
    onehot = jax.nn.one_hot(target, c, dtype=jnp.float32)
    batch_m = (onehot * m_list[None, :]).sum(axis=1, keepdims=True)
    out = jnp.where(onehot > 0, x.astype(jnp.float32) - batch_m, x.astype(jnp.float32))
    logp = jax.nn.log_softmax(s * out, axis=1)
    nll = -jnp.sum(onehot * logp, axis=1)
    if weight is None:
        return jnp.mean(nll)
    w_t = (onehot * weight[None, :]).sum(axis=1)
    return jnp.sum(w_t * nll) / jnp.sum(w_t)


if __name__ == "__main__":
    cls_num_list = [50, 30, 15, 5]          # C = 4 classes (long-tailed)
    C = len(cls_num_list)
    m_list = make_m_list(cls_num_list, max_m=0.5)

    key = jax.random.PRNGKey(0)
    kx1, kt1, kx2, kt2 = jax.random.split(key, 4)

    # Case 1: weight=None, small batch (single padded tile).
    N1 = 8
    x1 = jax.random.normal(kx1, (N1, C), dtype=jnp.float32)
    t1 = jax.random.randint(kt1, (N1,), 0, C, dtype=jnp.int32)
    loss1 = ldam_loss(x1, t1, m_list, s=30.0, weight=None)
    jax.block_until_ready(loss1)
    ref1 = _ldam_reference(x1, t1, m_list, 30.0, None)
    assert jnp.allclose(loss1, ref1, atol=1e-4, rtol=1e-4), (loss1, ref1)

    # Case 2: DRW class weights, multi-tile grid with a padded last tile
    # (tile_n=128 forces 3 tiles for N=300).
    N2 = 300
    x2 = jax.random.normal(kx2, (N2, C), dtype=jnp.float32)
    t2 = jax.random.randint(kt2, (N2,), 0, C, dtype=jnp.int32)
    w_drw = make_drw_weights(cls_num_list, beta=0.9999)
    loss2 = ldam_loss(x2, t2, m_list, s=30.0, weight=w_drw, tile_n=128)
    jax.block_until_ready(loss2)
    ref2 = _ldam_reference(x2, t2, m_list, 30.0, w_drw)
    assert jnp.allclose(loss2, ref2, atol=1e-4, rtol=1e-4), (loss2, ref2)

    print("KERNEL_OK")
</pallas_src>

<mosaic_0001>
module attributes {stable_mosaic.version = 11 : i64} {
  func.func @kernel(%arg0: i32, %arg1: memref<4x128xf32, #tpu.memory_space<vmem>>, %arg2: memref<1x128xi32, #tpu.memory_space<vmem>>, %arg3: memref<1x128xf32, #tpu.memory_space<vmem>>, %arg4: memref<1x128xf32, #tpu.memory_space<vmem>>, %arg5: memref<8x128xf32, #tpu.memory_space<vmem>>, %arg6: memref<8x128xf32, #tpu.memory_space<vmem>>) attributes {dimension_semantics = [#tpu.dimension_semantics<parallel>], iteration_bounds = array<i64: 1>, scalar_prefetch = 0 : i64, scratch_operands = 0 : i64, tpu.core_type = #tpu.core_type<tc>, window_params = [{transform_indices = @transform_0, window_bounds = array<i64: 4, 128>}, {transform_indices = @transform_1, window_bounds = array<i64: 1, 128>}, {transform_indices = @transform_2, window_bounds = array<i64: 1, 128>}, {transform_indices = @transform_3, window_bounds = array<i64: 1, 128>}, {transform_indices = @transform_4, window_bounds = array<i64: 8, 128>}, {transform_indices = @transform_5, window_bounds = array<i64: 8, 128>}]} {
    %c0 = arith.constant 0 : index
    %c0_0 = arith.constant 0 : index
    %0 = vector.load %arg1[%c0, %c0_0] : memref<4x128xf32, #tpu.memory_space<vmem>>, vector<4x128xf32>
    %c0_1 = arith.constant 0 : index
    %c0_2 = arith.constant 0 : index
    %1 = vector.load %arg2[%c0_1, %c0_2] : memref<1x128xi32, #tpu.memory_space<vmem>>, vector<1x128xi32>
    %c0_3 = arith.constant 0 : index
    %c0_4 = arith.constant 0 : index
    %2 = vector.load %arg3[%c0_3, %c0_4] : memref<1x128xf32, #tpu.memory_space<vmem>>, vector<1x128xf32>
    %c0_5 = arith.constant 0 : index
    %c0_6 = arith.constant 0 : index
    %3 = vector.load %arg4[%c0_5, %c0_6] : memref<1x128xf32, #tpu.memory_space<vmem>>, vector<1x128xf32>
    %4 = tpu.iota {dimensions = array<i32: 0>} : vector<4x128xi32>
    %5 = vector.broadcast %1 : vector<1x128xi32> to vector<4x128xi32>
    %6 = arith.cmpi eq, %4, %5 : vector<4x128xi32>
    %7 = arith.extui %6 : vector<4x128xi1> to vector<4x128xi32>
    %8 = arith.sitofp %7 : vector<4x128xi32> to vector<4x128xf32>
    %cst = arith.constant 3.000000e+01 : f32
    %9 = vector.broadcast %cst : f32 to vector<4x128xf32>
    %10 = arith.mulf %9, %0 : vector<4x128xf32>
    %cst_7 = arith.constant 3.000000e+01 : f32
    %11 = vector.broadcast %cst_7 : f32 to vector<1x128xf32>
    %12 = arith.mulf %11, %2 : vector<1x128xf32>
    %13 = vector.broadcast %12 : vector<1x128xf32> to vector<4x128xf32>
    %14 = arith.mulf %13, %8 : vector<4x128xf32>
    %15 = arith.subf %10, %14 : vector<4x128xf32>
    %cst_8 = arith.constant dense<0xFF800000> : vector<128xf32>
    %16 = vector.multi_reduction <maximumf>, %15, %cst_8 [0] : vector<4x128xf32> to vector<128xf32>
    %17 = vector.shape_cast %16 : vector<128xf32> to vector<1x128xf32>
    %18 = vector.broadcast %17 : vector<1x128xf32> to vector<4x128xf32>
    %19 = arith.subf %15, %18 : vector<4x128xf32>
    %20 = math.exp %19 : vector<4x128xf32>
    %cst_9 = arith.constant dense<0.000000e+00> : vector<128xf32>
    %21 = vector.multi_reduction <add>, %20, %cst_9 [0] : vector<4x128xf32> to vector<128xf32>
    %22 = vector.shape_cast %21 : vector<128xf32> to vector<1x128xf32>
    %23 = arith.mulf %15, %8 : vector<4x128xf32>
    %cst_10 = arith.constant dense<0.000000e+00> : vector<128xf32>
    %24 = vector.multi_reduction <add>, %23, %cst_10 [0] : vector<4x128xf32> to vector<128xf32>
    %25 = vector.shape_cast %24 : vector<128xf32> to vector<1x128xf32>
    %26 = math.log %22 : vector<1x128xf32>
    %27 = arith.addf %17, %26 : vector<1x128xf32>
    %28 = arith.subf %27, %25 : vector<1x128xf32>
    %29 = arith.mulf %3, %28 : vector<1x128xf32>
    %30 = vector.shape_cast %29 : vector<1x128xf32> to vector<1x1x128xf32>
    %cst_11 = arith.constant dense<0.000000e+00> : vector<1xf32>
    %31 = vector.multi_reduction <add>, %30, %cst_11 [1, 2] : vector<1x1x128xf32> to vector<1xf32>
    %32 = vector.shape_cast %31 : vector<1xf32> to vector<1x1x1xf32>
    %33 = vector.extract %32[0, 0, 0] : f32 from vector<1x1x1xf32>
    %34 = vector.broadcast %33 : f32 to vector<8x128xf32>
    %c0_12 = arith.constant 0 : index
    %c0_13 = arith.constant 0 : index
    %35 = vector.load %arg5[%c0_12, %c0_13] : memref<8x128xf32, #tpu.memory_space<vmem>>, vector<8x128xf32>
    tpu.vector_store %arg5[%c0_12, %c0_13], %34 {strides = array<i32>} : memref<8x128xf32, #tpu.memory_space<vmem>>, vector<8x128xf32>,
    %36 = vector.shape_cast %3 : vector<1x128xf32> to vector<1x1x128xf32>
    %cst_14 = arith.constant dense<0.000000e+00> : vector<1xf32>
    %37 = vector.multi_reduction <add>, %36, %cst_14 [1, 2] : vector<1x1x128xf32> to vector<1xf32>
    %38 = vector.shape_cast %37 : vector<1xf32> to vector<1x1x1xf32>
    %39 = vector.extract %38[0, 0, 0] : f32 from vector<1x1x1xf32>
    %40 = vector.broadcast %39 : f32 to vector<8x128xf32>
    %c0_15 = arith.constant 0 : index
    %c0_16 = arith.constant 0 : index
    %41 = vector.load %arg6[%c0_15, %c0_16] : memref<8x128xf32, #tpu.memory_space<vmem>>, vector<8x128xf32>
    tpu.vector_store %arg6[%c0_15, %c0_16], %40 {strides = array<i32>} : memref<8x128xf32, #tpu.memory_space<vmem>>, vector<8x128xf32>,
    return
  }
  func.func @transform_0(%arg0: i32) -> (i32, i32) {
    %c0_i32 = arith.constant 0 : i32
    %c0_i32_0 = arith.constant 0 : i32
    return %c0_i32, %arg0 : i32, i32
  }
  func.func @transform_1(%arg0: i32) -> (i32, i32) {
    %c0_i32 = arith.constant 0 : i32
    %c0_i32_0 = arith.constant 0 : i32
    return %c0_i32, %arg0 : i32, i32
  }
  func.func @transform_2(%arg0: i32) -> (i32, i32) {
    %c0_i32 = arith.constant 0 : i32
    %c0_i32_0 = arith.constant 0 : i32
    return %c0_i32, %arg0 : i32, i32
  }
  func.func @transform_3(%arg0: i32) -> (i32, i32) {
    %c0_i32 = arith.constant 0 : i32
    %c0_i32_0 = arith.constant 0 : i32
    return %c0_i32, %arg0 : i32, i32
  }
  func.func @transform_4(%arg0: i32) -> (i32, i32) {
    %c0_i32 = arith.constant 0 : i32
    %c0_i32_0 = arith.constant 0 : i32
    return %arg0, %c0_i32 : i32, i32
  }
  func.func @transform_5(%arg0: i32) -> (i32, i32) {
    %c0_i32 = arith.constant 0 : i32
    %c0_i32_0 = arith.constant 0 : i32
    return %arg0, %c0_i32 : i32, i32
  }
}

</mosaic_0001>

<bundles_post_ra>
// kernel: tpu_custom_call.1
= control target key start
LH: loop header
LB: loop body
LE: loop exit
PB: predicated region body
PF: predicated region fallthrough
CT: control target
= control target key end

     0   :  { %11 = vsyncpa [#allocation3], 0  ;;  %s328_s0 = inlined_call_operand.hbm [shape: f32[4,128], index: 0, kind: input, shape index: {}]   ;;  %s329_s1 = inlined_call_operand.hbm [shape: s32[1,128], index: 1, kind: input, shape index: {}]   ;;  %s330_s2 = inlined_call_operand.vmem [shape: f32[1,128], index: 2, kind: input, shape index: {}]   ;;  %s331_s3 = inlined_call_operand.vmem [shape: f32[1,128], index: 3, kind: input, shape index: {}]   ;;  %s332_s4 = inlined_call_operand.hbm [shape: f32[8,128], index: 4, kind: output, shape index: {0}]   ;;  %s333_s5 = inlined_call_operand.hbm [shape: f32[8,128], index: 5, kind: output, shape index: {1}]  }
   0x1   :  { %12 = vsyncpa [#allocation6], 0 }
   0x2   :  { %13 = vsyncpa [#allocation4], 0 }
   0x3   :  { %14 = vsyncpa [#allocation9], 0  ;;  %s20_s20 = sshll.u32 %s328_s0, 4  ;;  %s275_s21 = smov [#allocation2]   ;;  %s21_s20 = int_to_ptr.hbm [resolvable:$true] %s20_s20 }
   0x4   :  { %s22_s22 = sshll.u32 %s275_s21, 4  ;;  %s31_s25 = sshll.u32 %s329_s1, 4  ;;  %s23_s22 = int_to_ptr.vmem [resolvable:$true] %s22_s22  ;;  %s32_s25 = int_to_ptr.hbm [resolvable:$true] %s31_s25 }
   0x5   :  { %25 = dma.hbm_to_vmem [thread:$0]  %s21_s20, 64, %s23_s22, [#allocation3]  }
   0x6   :  { %s276_s26 = smov [#allocation5]  }
   0x7   :  { %s33_s27 = sshll.u32 %s276_s26, 4  ;;  %s34_s27 = int_to_ptr.vmem [resolvable:$true] %s33_s27 }
   0x8   :  { %36 = dma.hbm_to_vmem [thread:$0]  %s32_s25, 16, %s34_s27, [#allocation6]  }
   0x9   :  { %267 = dma.done.wait [#allocation3], 64  }
   0xa   :  { %268 = vsyncadd [#allocation3], 4294967232 }
   0xb   :  { %269 = dma.done.wait [#allocation6], 16  }
   0xc   :  { %270 = vsyncadd [#allocation6], 4294967280  ;;  %v53_v0 = vlaneseq  ;;  %v49_v2 = vld [vmem:[#allocation2] sm:$0xf]  ;;  %v166_v4 = vld [vmem:[#allocation5] ss:$0 sm:$0xff] }
   0xd   :  { %v51_v3 = vld [vmem:[%s330_s2] sm:$0x1]  ;;  %v59_v6 = vmul.f32 30.0, %v49_v2  ;;  %v277_v8 = vmov 0.0   ;;  %vm66_vm1 = vcmask 1043456   ;;  %vm97_vm2 = vcmask 1040384  }
   0xe   :  { %v54_v1 = vshrl.u32 %v53_v0, 7  ;;  %v60_v5 = vmul.f32 30.0, %v51_v3  ;;  %v52_v40 = vld [vmem:[%s331_s3] sm:$0x1]  ;;  %s278_s3 = smov [#allocation7]   ;;  %s129_s7 = sshll.u32 %s332_s4, 4  ;;  %s130_s7 = int_to_ptr.hbm [resolvable:$true] %s129_s7 }
   0xf   :  { %v110_v44 = vsel %vm97_vm2, %v52_v40, 0.0  ;;  %s127_s29 = sshll.u32 %s278_s3, 4  ;;  %s279_s9 = smov [#allocation8]   ;;  %s128_s29 = int_to_ptr.vmem [resolvable:$true] %s127_s29 }
  0x10   :  { %vm56_vm0 = vcmp.eq.s32.totalorder %v54_v1, %v166_v4  ;;  %v62_v7 = vperm.slane %v60_v5, 0  ;;  %s138_s10 = sshll.u32 %s279_s9, 4  ;;  %s140_s13 = sshll.u32 %s333_s5, 4  ;;  %s139_s10 = int_to_ptr.vmem [resolvable:$true] %s138_s10  ;;  %s141_s13 = int_to_ptr.hbm [resolvable:$true] %s140_s13 }
  0x11   :  { %v156_v9 = vsel %vm56_vm0, 1.0, %v277_v8 }
  0x12   :  { %v64_v10 = vmul.f32 %v156_v9, %v62_v7 }
  0x14   :  { %v65_v11 = vsub.f32 %v59_v6, %v64_v10 }
  0x16   :  { %v67_v12 = vsel %vm66_vm1, %v65_v11, -inf  ;;  %v84_v21 = vmul.f32 %v156_v9, %v65_v11 }
  0x17   :  { %v68_v13 = vrot.slane %v67_v12, 4 }
  0x18   :  { %v85_v22 = vsel %vm66_vm1, %v84_v21, 0.0 }
  0x19   :  { %v69_v14 = vmax.f32 %v67_v12, %v68_v13  ;;  %v86_v25 = vrot.slane %v85_v22, 4 }
  0x1b   :  { %v70_v15 = vrot.slane %v69_v14, 2  ;;  %v87_v28 = vadd.f32 %v86_v25, %v85_v22 }
  0x1d   :  { %v71_v16 = vmax.f32 %v69_v14, %v70_v15  ;;  %v88_v31 = vrot.slane %v87_v28, 2 }
  0x1f   :  { %v72_v17 = vrot.slane %v71_v16, 1  ;;  %v89_v34 = vadd.f32 %v88_v31, %v87_v28 }
  0x21   :  { %v73_v18 = vmax.f32 %v71_v16, %v72_v17  ;;  %v90_v35 = vrot.slane %v89_v34, 1 }
  0x23   :  { %v74_v19 = vsub.f32 %v65_v11, %v73_v18  ;;  %v91_v37 = vadd.f32 %v90_v35, %v89_v34 }
  0x25   :  { %v75_v20 = vmul.f32 1.442695, %v74_v19 }
  0x27   :  { %167 = vpow2.f32 %v75_v20 }
  0x2d   :  { %v168_v23 = vpop.eup %167 }
  0x2e   :  { %v77_v24 = vsel %vm66_vm1, %v168_v23, 0.0 }
  0x2f   :  { %v78_v26 = vrot.slane %v77_v24, 4 }
  0x31   :  { %v79_v27 = vadd.f32 %v78_v26, %v77_v24 }
  0x33   :  { %v80_v29 = vrot.slane %v79_v27, 2 }
  0x35   :  { %v81_v30 = vadd.f32 %v80_v29, %v79_v27 }
  0x37   :  { %v82_v32 = vrot.slane %v81_v30, 1 }
  0x39   :  { %v83_v33 = vadd.f32 %v82_v32, %v81_v30 }
  0x3b   :  { %169 = vlog2.f32 %v83_v33 }
  0x41   :  { %v170_v36 = vpop.eup %169 }
  0x42   :  { %v93_v38 = vmul.f32 0.6931472, %v170_v36 }
  0x44   :  { %v94_v39 = vadd.f32 %v93_v38, %v73_v18 }
  0x46   :  { %v95_v41 = vsub.f32 %v94_v39, %v91_v37 }
  0x48   :  { %v96_v42 = vmul.f32 %v95_v41, %v52_v40 }
  0x4a   :  { %v98_v43 = vsel %vm97_vm2, %v96_v42, 0.0 }
  0x4b   :  { %99 = vadd.xlane.f32.xlu0 %v98_v43 }
  0x53   :  { %111 = vadd.xlane.f32.xlu0 %v110_v44 }
  0xbe   :  { %v100_v45 = vpop.xlane.xlu0 %99 }
  0xbf   :  { %v101_v46 = vrot.slane %v100_v45, 4 }
  0xc1   :  { %v102_v47 = vadd.f32 %v101_v46, %v100_v45 }
  0xc3   :  { %v103_v48 = vrot.slane %v102_v47, 2 }
  0xc5   :  { %v104_v49 = vadd.f32 %v103_v48, %v102_v47 }
  0xc6   :  { %v112_v50 = vpop.xlane.xlu0 %111 }
  0xc7   :  { %v113_v51 = vrot.slane %v112_v50, 4  ;;  %v105_v52 = vrot.slane %v104_v49, 1 }
  0xc9   :  { %v114_v53 = vadd.f32 %v113_v51, %v112_v50  ;;  %v106_v54 = vadd.f32 %v105_v52, %v104_v49 }
  0xcb   :  { %v115_v55 = vrot.slane %v114_v53, 2  ;;  %157 = vpush %v106_v54 }
  0xcd   :  { %v116_v56 = vadd.f32 %v115_v55, %v114_v53 }
  0xcf   :  { %v117_v57 = vrot.slane %v116_v56, 1 }
  0xd1   :  { %v118_v58 = vadd.f32 %v117_v57, %v116_v56 }
  0xd3   :  { %159 = vpush %v118_v58 }
  0xfc   :  { %s158_s8 = spop %157 }
  0xfd   :  { %v108_v59 = vstv %s158_s8 }
  0xfe   :  { %109 = vst [vmem:[#allocation7] sm:$0xff] %v108_v59 }
  0xff   :  { %132 = dma.vmem_to_hbm [thread:$0]  %s128_s29, 128, %s130_s7, [#allocation4]  }
 0x104   :  { %s160_s14 = spop %159 }
 0x105   :  { %v120_v60 = vstv %s160_s14 }
 0x106   :  { %121 = vst [vmem:[#allocation8] sm:$0xff] %v120_v60 }
 0x107   :  { %143 = dma.vmem_to_hbm [thread:$0]  %s139_s10, 128, %s141_s13, [#allocation9]  }
 0x108   :  { %271 = dma.done.wait [#allocation4], 128  }
 0x109   :  { %272 = vsyncadd [#allocation4], 4294967168 }
 0x10a   :  { %273 = dma.done.wait [#allocation9], 128  }
 0x10b   :  { %274 = vsyncadd [#allocation9], 4294967168 }
 0x10c   :  { %152 = vsyncpa [#allocation3], 1 }
 0x10d   :  { %153 = vsyncpa [#allocation6], 1 }
 0x10e   :  { %154 = vsyncpa [#allocation4], 1 }
 0x10f   :  { %155 = vsyncpa [#allocation9], 1 }

</bundles_post_ra>
